<compile_context>
chip_gen: v6e
topology: v6e:2x2x1
jax: 0.10.0
libtpu: 0.0.40
codegen_flags: <defaults>
</compile_context>

<pallas_src>
import jax
import jax.numpy as jnp
from jax.experimental import pallas as pl
from jax.experimental.pallas import tpu as pltpu

LANE = 128
# Candidate lane-dense widths, widest first.
_WIDTHS = (4096, 2048, 1024, 512, 256, 128)
# Per-array block-size targets. 3 arrays x 2 pipeline buffers:
#   4 MiB -> 24 MiB total (fits v6e/v7x 32 MiB scoped VMEM, well under v7x's
#            64 MiB physical),
#   2 MiB -> 12 MiB total (fits v5e's 16 MiB default scoped VMEM).
_BLOCK_BYTES_DEFAULT = 4 * 1024 * 1024
_BLOCK_BYTES_V5 = 2 * 1024 * 1024
# Below this much total HBM traffic (in + in + out) the pallas_call overhead
# dominates; use plain jnp so XLA can also fuse with neighbors.
_SMALL_TOTAL_BYTES = 4 * 1024 * 1024

_CHIP_PROPS = None


def _chip_props():
    """(target_block_bytes, min_grid_steps, vmem_limit_bytes, native_lowp)."""
    global _CHIP_PROPS
    if _CHIP_PROPS is not None:
        return _CHIP_PROPS
    kind = ""
    try:
        kind = jax.devices()[0].device_kind.lower()
    except Exception:  # pragma: no cover - conservative fallback
        pass
    is_v5 = "v5" in kind
    is_v7 = ("v7" in kind) or ("7x" in kind)
    target = _BLOCK_BYTES_V5 if is_v5 else _BLOCK_BYTES_DEFAULT
    min_steps = 4 if is_v7 else 2          # v7x: 2 TCs/chip -> keep both busy
    vmem_limit = None if is_v5 else 30 * 1024 * 1024
    native_lowp = not is_v5                # v5e VPU has no bf16 path
    _CHIP_PROPS = (target, min_steps, vmem_limit, native_lowp)
    return _CHIP_PROPS


def _make_kernel(upcast):
    def kernel(lam_ref, x1_ref, x2_ref, o_ref):
        # lam_ref: (1, 1) f32 scalar in SMEM; x1/x2/o: (block_rows, width) tiles.
        lam = lam_ref[0, 0]
        x1 = x1_ref[...]
        x2 = x2_ref[...]
        if upcast and o_ref.dtype != jnp.float32:
            x1f = x1.astype(jnp.float32)
            x2f = x2.astype(jnp.float32)
            o_ref[...] = ((1.0 - lam) * x1f + lam * x2f).astype(o_ref.dtype)
        else:
            # Coefficients formed in f32, then cast once; combine in the
            # input dtype (f32 no-op, bf16/f16 native on v6e/v7x).
            a = (1.0 - lam).astype(o_ref.dtype)
            b = lam.astype(o_ref.dtype)
            o_ref[...] = a * x1 + b * x2
    return kernel


def concatenate_convex(input1, input2, lam, *, force_pallas=False):
    """out = (1 - lam) * input1 + lam * input2, elementwise (lam is (1, 1))."""
    assert input1.shape == input2.shape and input1.dtype == input2.dtype
    orig_shape = input1.shape
    dtype = input1.dtype
    flat = int(input1.size)
    itemsize = jnp.dtype(dtype).itemsize

    lamf = jnp.asarray(lam, dtype=jnp.float32).reshape(())   # scalar
    lam32 = lamf.reshape(1, 1)                                # (1,1) for SMEM

    def jnp_combine(a, b):
        out = (1.0 - lamf) * a.astype(jnp.float32) + lamf * b.astype(jnp.float32)
        return out.astype(dtype)

    # --- Small-tensor fast path --------------------------------------------
    if (not force_pallas) and 3 * flat * itemsize < _SMALL_TOTAL_BYTES:
        return jnp_combine(input1, input2)

    target_bytes, min_steps, vmem_limit, native_lowp = _chip_props()

    # --- Pick a lane-dense 2D view ------------------------------------------
    x1f = input1.reshape(-1)
    x2f = input2.reshape(-1)

    width = None
    for w in _WIDTHS:
        if flat % w == 0:
            width = w
            break
    if width is not None:
        main = flat
    else:
        # Misaligned flat size: run the kernel over the aligned prefix only,
        # handle the short tail in plain jnp (no full-tensor pad/slice copies).
        width = 512 if flat >= 512 else LANE
        main = (flat // width) * width
    if main == 0:
        return jnp_combine(input1, input2)

    if main == flat:
        x1m = x1f.reshape(-1, width)
        x2m = x2f.reshape(-1, width)
    else:
        x1m = x1f[:main].reshape(-1, width)
        x2m = x2f[:main].reshape(-1, width)
    rows = main // width

    # --- Block sizing --------------------------------------------------------
    # Sublane quantum per dtype (f32: 8, bf16/f16: 16, int8/fp8: 32).
    sub = {4: 8, 2: 16, 1: 32}.get(itemsize, 8)
    max_rows = max(sub, (target_bytes // (width * itemsize)) // sub * sub)
    block_rows = min(rows, max_rows)
    # Guarantee >= min_steps grid steps when rows allow it (megacore sharding).
    if rows >= min_steps * sub:
        cap = max(sub, (rows // min_steps) // sub * sub)
        block_rows = min(block_rows, cap)
    grid = (pl.cdiv(rows, block_rows),)

    native = (dtype == jnp.float32) or (
        native_lowp and dtype in (jnp.bfloat16, jnp.float16))
    kernel = _make_kernel(upcast=not native)

    cp_kwargs = dict(dimension_semantics=("parallel",))
    if vmem_limit is not None:
        cp_kwargs["vmem_limit_bytes"] = vmem_limit

    out_main = pl.pallas_call(
        kernel,
        out_shape=jax.ShapeDtypeStruct((rows, width), dtype),
        grid=grid,
        in_specs=[
            pl.BlockSpec(memory_space=pltpu.SMEM),                # lambda scalar
            pl.BlockSpec((block_rows, width), lambda i: (i, 0)),  # input1 tile
            pl.BlockSpec((block_rows, width), lambda i: (i, 0)),  # input2 tile
        ],
        out_specs=pl.BlockSpec((block_rows, width), lambda i: (i, 0)),
        compiler_params=pltpu.CompilerParams(**cp_kwargs),
        cost_estimate=pl.CostEstimate(
            flops=3 * main,
            transcendentals=0,
            bytes_accessed=3 * main * itemsize),
    )(lam32, x1m, x2m)

    out_flat = out_main.reshape(-1)
    if main != flat:
        tail = jnp_combine(x1f[main:], x2f[main:])
        out_flat = jnp.concatenate([out_flat, tail])
    return out_flat.reshape(orig_shape)


if __name__ == "__main__":
    key = jax.random.PRNGKey(0)
    k1, k2, k3, k4, k5, k6, k7 = jax.random.split(key, 7)

    # Small NCHW inputs consistent with the module's forward.
    B, C, H, W = 2, 4, 16, 16
    input1 = jax.random.normal(k1, (B, C, H, W), dtype=jnp.float32)
    input2 = jax.random.normal(k2, (B, C, H, W), dtype=jnp.float32)

    # Parameter init exactly as in __init__: lambda = zeros(1, 1).
    lam = jnp.zeros((1, 1), dtype=jnp.float32)

    # Force the Pallas kernel even at this tiny demo size (default dispatch
    # would take the small-tensor jnp fast path).
    out = jax.block_until_ready(
        concatenate_convex(input1, input2, lam, force_pallas=True))
    ref = (1.0 - lam) * input1 + lam * input2
    assert out.shape == ref.shape and out.dtype == ref.dtype
    assert jnp.allclose(out, ref, atol=1e-6, rtol=1e-6)

    # Default entry point (small-tensor fast path) must agree.
    out_fast = jax.block_until_ready(concatenate_convex(input1, input2, lam))
    assert jnp.allclose(out_fast, ref, atol=1e-6, rtol=1e-6)

    # Multi-block grid path with a nonzero lambda (lane-dense, several steps).
    lam2 = jnp.full((1, 1), 0.25, dtype=jnp.float32)
    a = jax.random.normal(k3, (4, 64, 512), dtype=jnp.float32)
    b = jax.random.normal(k4, (4, 64, 512), dtype=jnp.float32)
    out2 = jax.block_until_ready(
        concatenate_convex(a, b, lam2, force_pallas=True))
    ref2 = (1.0 - lam2) * a + lam2 * b
    assert jnp.allclose(out2, ref2, atol=1e-6, rtol=1e-6)

    # Misaligned flat size (flat % 128 != 0): aligned-prefix kernel + jnp tail.
    c = jax.random.normal(k5, (3, 5, 7, 9), dtype=jnp.float32)
    d = jax.random.normal(k6, (3, 5, 7, 9), dtype=jnp.float32)
    out3 = jax.block_until_ready(
        concatenate_convex(c, d, lam2, force_pallas=True))
    ref3 = (1.0 - lam2) * c + lam2 * d
    assert jnp.allclose(out3, ref3, atol=1e-6, rtol=1e-6)

    # bf16 path (native combine on v6e/v7x, f32 round-trip on v5 family).
    e = jax.random.normal(k7, (4, 64, 512), dtype=jnp.float32)
    e_bf = e.astype(jnp.bfloat16)
    f_bf = a.astype(jnp.bfloat16)
    out4 = jax.block_until_ready(
        concatenate_convex(e_bf, f_bf, lam2, force_pallas=True))
    ref4 = (1.0 - lam2) * e_bf.astype(jnp.float32) + lam2 * f_bf.astype(jnp.float32)
    assert out4.dtype == jnp.bfloat16
    assert jnp.allclose(out4.astype(jnp.float32), ref4, atol=5e-2, rtol=5e-2)

    print("KERNEL_OK")
</pallas_src>

<mosaic_0001>
module attributes {stable_mosaic.version = 11 : i64} {
  func.func @kernel(%arg0: i32, %arg1: memref<1x1xf32, #tpu.memory_space<smem>>, %arg2: memref<1x2048xf32, #tpu.memory_space<vmem>>, %arg3: memref<1x2048xf32, #tpu.memory_space<vmem>>, %arg4: memref<1x2048xf32, #tpu.memory_space<vmem>>) attributes {dimension_semantics = [#tpu.dimension_semantics<parallel>], iteration_bounds = array<i64: 1>, scalar_prefetch = 0 : i64, scratch_operands = 0 : i64, tpu.core_type = #tpu.core_type<tc>, window_params = [{transform_indices = @transform_0, window_bounds = array<i64: 1, 1>}, {transform_indices = @transform_1, window_bounds = array<i64: 1, 2048>}, {transform_indices = @transform_2, window_bounds = array<i64: 1, 2048>}, {transform_indices = @transform_3, window_bounds = array<i64: 1, 2048>}]} {
    %c0 = arith.constant 0 : index
    %c0_0 = arith.constant 0 : index
    %0 = memref.load %arg1[%c0, %c0_0] : memref<1x1xf32, #tpu.memory_space<smem>>
    %c0_1 = arith.constant 0 : index
    %c0_2 = arith.constant 0 : index
    %1 = vector.load %arg2[%c0_1, %c0_2] : memref<1x2048xf32, #tpu.memory_space<vmem>>, vector<1x2048xf32>
    %c0_3 = arith.constant 0 : index
    %c0_4 = arith.constant 0 : index
    %2 = vector.load %arg3[%c0_3, %c0_4] : memref<1x2048xf32, #tpu.memory_space<vmem>>, vector<1x2048xf32>
    %cst = arith.constant 1.000000e+00 : f32
    %3 = arith.subf %cst, %0 : f32
    %4 = vector.broadcast %3 : f32 to vector<1x2048xf32>
    %5 = arith.mulf %4, %1 : vector<1x2048xf32>
    %6 = vector.broadcast %0 : f32 to vector<1x2048xf32>
    %7 = arith.mulf %6, %2 : vector<1x2048xf32>
    %8 = arith.addf %5, %7 : vector<1x2048xf32>
    %c0_5 = arith.constant 0 : index
    %c0_6 = arith.constant 0 : index
    %9 = vector.load %arg4[%c0_5, %c0_6] : memref<1x2048xf32, #tpu.memory_space<vmem>>, vector<1x2048xf32>
    tpu.vector_store %arg4[%c0_5, %c0_6], %8 {strides = array<i32>} : memref<1x2048xf32, #tpu.memory_space<vmem>>, vector<1x2048xf32>,
    return
  }
  func.func @transform_0(%arg0: i32) -> (i32, i32) {
    %c0_i32 = arith.constant 0 : i32
    %c0_i32_0 = arith.constant 0 : i32
    %c0_i32_1 = arith.constant 0 : i32
    return %c0_i32, %c0_i32_0 : i32, i32
  }
  func.func @transform_1(%arg0: i32) -> (i32, i32) {
    %c0_i32 = arith.constant 0 : i32
    %c0_i32_0 = arith.constant 0 : i32
    return %arg0, %c0_i32 : i32, i32
  }
  func.func @transform_2(%arg0: i32) -> (i32, i32) {
    %c0_i32 = arith.constant 0 : i32
    %c0_i32_0 = arith.constant 0 : i32
    return %arg0, %c0_i32 : i32, i32
  }
  func.func @transform_3(%arg0: i32) -> (i32, i32) {
    %c0_i32 = arith.constant 0 : i32
    %c0_i32_0 = arith.constant 0 : i32
    return %arg0, %c0_i32 : i32, i32
  }
}

</mosaic_0001>

<bundles_post_ra>
// kernel: tpu_custom_call.1
= control target key start
LH: loop header
LB: loop body
LE: loop exit
PB: predicated region body
PF: predicated region fallthrough
CT: control target
= control target key end

     0   :  { %9 = vsyncpa [#allocation4], 0  ;;  %s179_s0 = inlined_call_operand.<no memory space> [shape: f32[1,1], index: 0, kind: input, shape index: {}]   ;;  %s180_s1 = inlined_call_operand.hbm [shape: f32[1,2048], index: 1, kind: input, shape index: {}]   ;;  %s181_s2 = inlined_call_operand.hbm [shape: f32[1,2048], index: 2, kind: input, shape index: {}]   ;;  %s182_s3 = inlined_call_operand.hbm [shape: f32[1,2048], index: 3, kind: output, shape index: {}]  }
   0x1   :  { %10 = vsyncpa [#allocation7], 0 }
   0x2   :  { %11 = vsyncpa [#allocation5], 0  ;;  %s141_s12 = smov [#allocation3]   ;;  %s142_s14 = smov [#allocation6]  }
   0x3   :  { %s20_s13 = sshll.u32 %s141_s12, 4  ;;  %s30_s15 = sshll.u32 %s142_s14, 4  ;;  %s21_s13 = int_to_ptr.vmem [resolvable:$true] %s20_s13  ;;  %s31_s15 = int_to_ptr.vmem [resolvable:$true] %s30_s15 }
   0x4   :  { %s83_s16 = scalar_lea.vmem %s21_s13, 256  ;;  %p88_p1 = scmp.lt.s32.totalorder %s21_s13, %s21_s13 }
   0x5   :  { %p84_p0 = scmp.ne.s32.totalorder %s21_s13, %s83_s16  ;;  %p89_p2 = scmp.lt.s32.totalorder %s83_s16, %s83_s16 }
   0x7   :  { %p90_p3 = por %p89_p2, %p88_p1 }
   0x9   :  { %p91_p4 = pnand %p90_p3, %p84_p0 }
   0xb   :  { %94 = shalt.err (!%p91_p4)
}
   0xc   :  { %23 = dma.hbm_to_vmem [thread:$0]  %s180_s1, 256, %s21_s13, [#allocation4]  }
   0xd   :  { %s103_s19 = scalar_lea.vmem %s31_s15, 256  ;;  %p108_p6 = scmp.lt.s32.totalorder %s31_s15, %s31_s15 }
   0xe   :  { %p104_p5 = scmp.ne.s32.totalorder %s31_s15, %s103_s19  ;;  %p109_p7 = scmp.lt.s32.totalorder %s103_s19, %s103_s19 }
  0x10   :  { %p110_p8 = por %p109_p7, %p108_p6 }
  0x12   :  { %p111_p9 = pnand %p110_p8, %p104_p5 }
  0x14   :  { %114 = shalt.err (!%p111_p9)
}
  0x15   :  { %33 = dma.hbm_to_vmem [thread:$0]  %s181_s2, 256, %s31_s15, [#allocation7]  }
  0x16   :  { %135 = dma.done.wait [#allocation4], 256  }
  0x17   :  { %136 = vsyncadd [#allocation4], 4294967040 }
  0x18   :  { %137 = dma.done.wait [#allocation7], 256  }
  0x19   :  { %138 = vsyncadd [#allocation7], 4294967040  ;;  %s45_s24 = ssub.f32 1.0, %s179_s0  ;;  %v49_v1 = vstv %s179_s0  ;;  %v41_v2 = vld [vmem:[#allocation3] sm:$0xff]  ;;  %v43_v3 = vld [vmem:[#allocation6] sm:$0xff]  ;;  %s143_s2 = smov [#allocation8]  }
  0x1a   :  { %v42_v4 = vld [vmem:[#allocation3 + $0x8] sm:$0xff]  ;;  %v50_v6 = vmul.f32 %v49_v1, %v43_v3  ;;  %v44_v7 = vld [vmem:[#allocation6 + $0x8] sm:$0xff]  ;;  %s62_s26 = sshll.u32 %s143_s2, 4  ;;  %s63_s26 = int_to_ptr.vmem [resolvable:$true] %s62_s26 }
  0x1b   :  { %v46_v0 = vstv %s45_s24  ;;  %v51_v9 = vmul.f32 %v49_v1, %v44_v7  ;;  %s115_s27 = scalar_lea.vmem %s63_s26, 256  ;;  %p120_p11 = scmp.lt.s32.totalorder %s63_s26, %s63_s26 }
  0x1c   :  { %v47_v5 = vmul.f32 %v46_v0, %v41_v2  ;;  %v48_v8 = vmul.f32 %v46_v0, %v42_v4  ;;  %p116_p10 = scmp.ne.s32.totalorder %s63_s26, %s115_s27  ;;  %p121_p12 = scmp.lt.s32.totalorder %s115_s27, %s115_s27 }
  0x1e   :  { %v52_v10 = vadd.f32 %v50_v6, %v47_v5  ;;  %v53_v11 = vadd.f32 %v51_v9, %v48_v8  ;;  %p122_p13 = por %p121_p12, %p120_p11 }
  0x20   :  { %54 = vst [vmem:[#allocation8] sm:$0xff] %v52_v10  ;;  %55 = vst [vmem:[#allocation8 + $0x8] sm:$0xff] %v53_v11  ;;  %p123_p0 = pnand %p122_p13, %p116_p10 }
  0x22   :  { %126 = shalt.err (!%p123_p0)
}
  0x23   :  { %65 = dma.vmem_to_hbm [thread:$0]  %s63_s26, 256, %s182_s3, [#allocation5]  }
  0x24   :  { %139 = dma.done.wait [#allocation5], 256  }
  0x25   :  { %140 = vsyncadd [#allocation5], 4294967040 }
  0x26   :  { %69 = vsyncpa [#allocation4], 1 }
  0x27   :  { %70 = vsyncpa [#allocation7], 1 }
  0x28   :  { %71 = vsyncpa [#allocation5], 1 }

</bundles_post_ra>
